<compile_context>
chip_gen: v7x
topology: tpu7x:2x2x1
jax: 0.10.0
libtpu: 0.0.40
codegen_flags: <defaults>
</compile_context>

<pallas_src>
import functools

import jax
import jax.numpy as jnp
from jax.experimental import pallas as pl
from jax.experimental.pallas import tpu as pltpu

LN_EPS = 1e-5        # PyTorch nn.LayerNorm default
FC1_PAD = 512        # 400 padded up to a multiple of 128
FC2_PAD = 384        # 300 padded up to a multiple of 128


def _round_up(x, m):
    return (x + m - 1) // m * m


def critic_kernel(s_ref, a_ref,            # bf16 activations, (TILE_B, dim)
                  w1s_ref, w1a_ref,        # bf16 fc1 weight split by input rows
                  p1_ref,                  # f32 [8, FC1_PAD]: b1, g1, be1 (pads = 0)
                  w2_ref,                  # bf16 [FC1_PAD, FC2_PAD]
                  p2_ref,                  # f32 [8, FC2_PAD]: b2, g2, be2, w3, b3@[4,0]
                  out_ref,                 # f32 (TILE_B, 1)
                  *, inv_n1, inv_n2):
    s = s_ref[...]
    a = a_ref[...]

    # ---- fc1 (concat fused: x@W1 == s@W1_s + a@W1_a) + LayerNorm1 + ReLU ----
    h = (jnp.dot(s, w1s_ref[...], preferred_element_type=jnp.float32)
         + jnp.dot(a, w1a_ref[...], preferred_element_type=jnp.float32)
         + p1_ref[0:1, :])
    # Padded columns of h are exactly 0 (zero weight cols + zero bias), so the
    # sums below are correct with inv_n = 1/true_feature_count.
    mu1 = jnp.sum(h, axis=-1, keepdims=True) * inv_n1            # XLU reduce
    ex2_1 = jnp.sum(h * h, axis=-1, keepdims=True) * inv_n1      # independent XLU reduce
    var1 = jnp.maximum(ex2_1 - mu1 * mu1, 0.0)                   # biased var (PyTorch LN)
    h = (h - mu1) * jax.lax.rsqrt(var1 + LN_EPS)
    h = h * p1_ref[1:2, :] + p1_ref[2:3, :]                      # padded gamma/beta = 0
    h = jnp.maximum(h, 0.0)

    # ---- fc2 + LayerNorm2 + ReLU (bf16 MXU operands, f32 accumulation) ----
    h2 = (jnp.dot(h.astype(jnp.bfloat16), w2_ref[...],
                  preferred_element_type=jnp.float32)
          + p2_ref[0:1, :])
    mu2 = jnp.sum(h2, axis=-1, keepdims=True) * inv_n2
    ex2_2 = jnp.sum(h2 * h2, axis=-1, keepdims=True) * inv_n2
    var2 = jnp.maximum(ex2_2 - mu2 * mu2, 0.0)
    h2 = (h2 - mu2) * jax.lax.rsqrt(var2 + LN_EPS)
    h2 = h2 * p2_ref[1:2, :] + p2_ref[2:3, :]
    h2 = jnp.maximum(h2, 0.0)

    # ---- fc3 (scalar Q head): VPU mul + lane reduce instead of N=1 MXU matmul ----
    w3 = p2_ref[3:4, :]          # [1, FC2_PAD], padded entries are 0
    b3 = p2_ref[4:5, 0:1]        # [1, 1]
    out_ref[...] = jnp.sum(h2 * w3, axis=-1, keepdims=True) + b3


def critic_forward(state, action, params, *, tile_b=256):
    """state: [B, state_dim], action: [B, action_dim] -> [B, 1] float32."""
    B, state_dim = state.shape
    action_dim = action.shape[1]
    fc1_true = int(params["fc1_dim"])
    fc2_true = int(params["fc2_dim"])

    # Batch tiling: multiple of 8 sublanes, pad B up to a multiple of the tile.
    tile_b = max(8, _round_up(min(tile_b, _round_up(B, 8)), 8))
    b_pad = _round_up(B, tile_b)
    grid = (b_pad // tile_b,)

    s = state.astype(jnp.bfloat16)
    a = action.astype(jnp.bfloat16)
    if b_pad != B:
        s = jnp.pad(s, ((0, b_pad - B), (0, 0)))
        a = jnp.pad(a, ((0, b_pad - B), (0, 0)))

    w1_s, w1_a = params["w1_s"], params["w1_a"]
    pack1, w2, pack2 = params["pack1"], params["w2"], params["pack2"]

    # Weights: full-shape blocks, constant index -> DMA'd once, stay VMEM-resident.
    def resident(shape):
        return pl.BlockSpec(shape, lambda i: (0,) * len(shape))

    in_specs = [
        pl.BlockSpec((tile_b, state_dim), lambda i: (i, 0)),
        pl.BlockSpec((tile_b, action_dim), lambda i: (i, 0)),
        resident(w1_s.shape),
        resident(w1_a.shape),
        resident(pack1.shape),
        resident(w2.shape),
        resident(pack2.shape),
    ]
    out_spec = pl.BlockSpec((tile_b, 1), lambda i: (i, 0))

    # VMEM budget: resident weights (+ headroom for their buffers) + per-tile
    # double-buffered activations + f32 temps for the (tile_b, 512/384) blocks.
    resident_bytes = ((w1_s.size + w1_a.size + w2.size) * 2
                      + (pack1.size + pack2.size) * 4)
    per_tile_bytes = (2 * tile_b * (state_dim + action_dim) * 2   # bf16 in tiles x2
                      + 2 * tile_b * 1 * 4                        # out tiles x2
                      + 8 * tile_b * FC1_PAD * 4)                 # f32 temps headroom
    vmem_limit = int(min(max(resident_bytes * 2 + per_tile_bytes + (2 << 20),
                             8 << 20), 48 << 20))

    # Advisory cost for XLA's scheduler.
    flops = 2 * b_pad * ((state_dim + action_dim) * FC1_PAD
                         + FC1_PAD * FC2_PAD + FC2_PAD)
    bytes_accessed = (s.size * 2 + a.size * 2 + resident_bytes + b_pad * 4)
    cost = pl.CostEstimate(flops=flops, transcendentals=2 * b_pad,
                           bytes_accessed=bytes_accessed)

    kernel = functools.partial(critic_kernel,
                               inv_n1=1.0 / fc1_true,
                               inv_n2=1.0 / fc2_true)

    q = pl.pallas_call(
        kernel,
        out_shape=jax.ShapeDtypeStruct((b_pad, 1), jnp.float32),
        grid=grid,
        in_specs=in_specs,
        out_specs=out_spec,
        compiler_params=pltpu.CompilerParams(
            dimension_semantics=("parallel",),
            vmem_limit_bytes=vmem_limit),
        cost_estimate=cost,
    )(s, a, w1_s, w1_a, pack1, w2, pack2)

    return q[:B]


def init_params(key, state_dim, action_dim, fc1_dim=400, fc2_dim=300):
    """Deterministic synthetic init (shapes match nn.Linear / nn.LayerNorm)."""
    in_dim = state_dim + action_dim
    k1, k2, k3, k4, k5, k6 = jax.random.split(key, 6)

    def lin(kw, kb, d_in, d_out):
        bound = 1.0 / jnp.sqrt(jnp.float32(d_in))
        # weight stored transposed: [d_in, d_out]  (PyTorch stores [d_out, d_in])
        w = jax.random.uniform(kw, (d_in, d_out), jnp.float32, -bound, bound)
        b = jax.random.uniform(kb, (d_out,), jnp.float32, -bound, bound)
        return w, b

    w1, b1 = lin(k1, k2, in_dim, fc1_dim)
    w2, b2 = lin(k3, k4, fc1_dim, fc2_dim)
    w3, b3 = lin(k5, k6, fc2_dim, 1)

    g1 = jnp.ones((fc1_dim,), jnp.float32)
    be1 = jnp.zeros((fc1_dim,), jnp.float32)
    g2 = jnp.ones((fc2_dim,), jnp.float32)
    be2 = jnp.zeros((fc2_dim,), jnp.float32)

    # Zero-pad features to lane multiples; pads must be exactly zero.
    w1_pad = jnp.zeros((in_dim, FC1_PAD), jnp.float32).at[:, :fc1_dim].set(w1)
    w2_pad = jnp.zeros((FC1_PAD, FC2_PAD), jnp.float32).at[:fc1_dim, :fc2_dim].set(w2)

    pack1 = jnp.zeros((8, FC1_PAD), jnp.float32)
    pack1 = pack1.at[0, :fc1_dim].set(b1).at[1, :fc1_dim].set(g1).at[2, :fc1_dim].set(be1)

    pack2 = jnp.zeros((8, FC2_PAD), jnp.float32)
    pack2 = (pack2.at[0, :fc2_dim].set(b2).at[1, :fc2_dim].set(g2)
                  .at[2, :fc2_dim].set(be2).at[3, :fc2_dim].set(w3[:, 0])
                  .at[4, 0].set(b3[0]))

    return {
        "w1_s": w1_pad[:state_dim].astype(jnp.bfloat16),   # [state_dim, FC1_PAD]
        "w1_a": w1_pad[state_dim:].astype(jnp.bfloat16),   # [action_dim, FC1_PAD]
        "pack1": pack1,                                    # rows: b1, g1, be1
        "w2": w2_pad.astype(jnp.bfloat16),                 # [FC1_PAD, FC2_PAD]
        "pack2": pack2,                                    # rows: b2, g2, be2, w3, b3@[4,0]
        "fc1_dim": fc1_dim,
        "fc2_dim": fc2_dim,
        # Unpadded f32 originals for the reference check.
        "_ref": {"w1": w1, "b1": b1, "w2": w2, "b2": b2, "w3": w3, "b3": b3,
                 "g1": g1, "be1": be1, "g2": g2, "be2": be2},
    }


def critic_ref(state, action, p):
    """Plain-JAX reference mirroring the kernel's bf16-matmul / f32-accumulate math."""
    r = p["_ref"]
    x = jnp.concatenate([state, action], axis=-1).astype(jnp.bfloat16)

    def layernorm(h):
        mu = h.mean(-1, keepdims=True)
        var = ((h - mu) ** 2).mean(-1, keepdims=True)
        return (h - mu) * jax.lax.rsqrt(var + LN_EPS)

    h = jnp.dot(x, r["w1"].astype(jnp.bfloat16),
                preferred_element_type=jnp.float32) + r["b1"]
    h = jax.nn.relu(layernorm(h) * r["g1"] + r["be1"])
    h = jnp.dot(h.astype(jnp.bfloat16), r["w2"].astype(jnp.bfloat16),
                preferred_element_type=jnp.float32) + r["b2"]
    h = jax.nn.relu(layernorm(h) * r["g2"] + r["be2"])
    return (h * r["w3"][:, 0]).sum(-1, keepdims=True) + r["b3"][0]


if __name__ == "__main__":
    key = jax.random.PRNGKey(0)
    kp, ks, ka = jax.random.split(key, 3)

    batch, state_dim, action_dim = 8, 12, 4
    params = init_params(kp, state_dim, action_dim, fc1_dim=400, fc2_dim=300)
    state = jax.random.normal(ks, (batch, state_dim), jnp.float32)
    action = jax.random.normal(ka, (batch, action_dim), jnp.float32)

    q = critic_forward(state, action, params)
    q = jax.block_until_ready(q)

    q_ref = critic_ref(state, action, params)
    assert q.shape == (batch, 1)
    assert jnp.allclose(q, q_ref, atol=5e-3, rtol=5e-3), (q, q_ref)
    print("KERNEL_OK")
</pallas_src>

<mosaic_0001>
module attributes {stable_mosaic.version = 11 : i64} {
  func.func @critic_kernel(%arg0: i32, %arg1: memref<8x12xbf16, #tpu.memory_space<vmem>>, %arg2: memref<8x4xbf16, #tpu.memory_space<vmem>>, %arg3: memref<12x512xbf16, #tpu.memory_space<vmem>>, %arg4: memref<4x512xbf16, #tpu.memory_space<vmem>>, %arg5: memref<8x512xf32, #tpu.memory_space<vmem>>, %arg6: memref<512x384xbf16, #tpu.memory_space<vmem>>, %arg7: memref<8x384xf32, #tpu.memory_space<vmem>>, %arg8: memref<8x1xf32, #tpu.memory_space<vmem>>) attributes {dimension_semantics = [#tpu.dimension_semantics<parallel>], iteration_bounds = array<i64: 1>, scalar_prefetch = 0 : i64, scratch_operands = 0 : i64, tpu.core_type = #tpu.core_type<tc>, window_params = [{transform_indices = @transform_0, window_bounds = array<i64: 8, 12>}, {transform_indices = @transform_1, window_bounds = array<i64: 8, 4>}, {pipeline_mode = #tpu.pipeline_mode<synchronous>, transform_indices = @transform_2, window_bounds = array<i64: 12, 512>}, {pipeline_mode = #tpu.pipeline_mode<synchronous>, transform_indices = @transform_3, window_bounds = array<i64: 4, 512>}, {pipeline_mode = #tpu.pipeline_mode<synchronous>, transform_indices = @transform_4, window_bounds = array<i64: 8, 512>}, {pipeline_mode = #tpu.pipeline_mode<synchronous>, transform_indices = @transform_5, window_bounds = array<i64: 512, 384>}, {pipeline_mode = #tpu.pipeline_mode<synchronous>, transform_indices = @transform_6, window_bounds = array<i64: 8, 384>}, {transform_indices = @transform_7, window_bounds = array<i64: 8, 1>}]} {
    %c0 = arith.constant 0 : index
    %c0_0 = arith.constant 0 : index
    %0 = vector.load %arg1[%c0, %c0_0] : memref<8x12xbf16, #tpu.memory_space<vmem>>, vector<8x12xbf16>
    %c0_1 = arith.constant 0 : index
    %c0_2 = arith.constant 0 : index
    %1 = vector.load %arg2[%c0_1, %c0_2] : memref<8x4xbf16, #tpu.memory_space<vmem>>, vector<8x4xbf16>
    %c0_3 = arith.constant 0 : index
    %c0_4 = arith.constant 0 : index
    %2 = vector.load %arg3[%c0_3, %c0_4] : memref<12x512xbf16, #tpu.memory_space<vmem>>, vector<12x512xbf16>
    %cst = arith.constant dense<0.000000e+00> : vector<8x512xf32>
    %3 = tpu.matmul %0, %2, %cst {dimension_numbers = #tpu.dot_dimension_numbers<[1], [0], [0], [1], [0, 0, 1, 1], [], []>} : vector<8x12xbf16>, vector<12x512xbf16>, vector<8x512xf32> -> vector<8x512xf32>
    %c0_5 = arith.constant 0 : index
    %c0_6 = arith.constant 0 : index
    %4 = vector.load %arg4[%c0_5, %c0_6] : memref<4x512xbf16, #tpu.memory_space<vmem>>, vector<4x512xbf16>
    %cst_7 = arith.constant dense<0.000000e+00> : vector<8x512xf32>
    %5 = tpu.matmul %1, %4, %cst_7 {dimension_numbers = #tpu.dot_dimension_numbers<[1], [0], [0], [1], [0, 0, 1, 1], [], []>} : vector<8x4xbf16>, vector<4x512xbf16>, vector<8x512xf32> -> vector<8x512xf32>
    %6 = arith.addf %3, %5 : vector<8x512xf32>
    %c0_8 = arith.constant 0 : index
    %c0_9 = arith.constant 0 : index
    %7 = vector.load %arg5[%c0_8, %c0_9] : memref<8x512xf32, #tpu.memory_space<vmem>>, vector<1x512xf32>
    %8 = vector.broadcast %7 : vector<1x512xf32> to vector<8x512xf32>
    %9 = arith.addf %6, %8 : vector<8x512xf32>
    %cst_10 = arith.constant dense<0.000000e+00> : vector<8xf32>
    %10 = vector.multi_reduction <add>, %9, %cst_10 [1] : vector<8x512xf32> to vector<8xf32>
    %11 = vector.shape_cast %10 : vector<8xf32> to vector<8x1xf32>
    %cst_11 = arith.constant 2.500000e-03 : f32
    %12 = vector.broadcast %cst_11 : f32 to vector<8x1xf32>
    %13 = arith.mulf %11, %12 : vector<8x1xf32>
    %14 = arith.mulf %9, %9 : vector<8x512xf32>
    %cst_12 = arith.constant dense<0.000000e+00> : vector<8xf32>
    %15 = vector.multi_reduction <add>, %14, %cst_12 [1] : vector<8x512xf32> to vector<8xf32>
    %16 = vector.shape_cast %15 : vector<8xf32> to vector<8x1xf32>
    %cst_13 = arith.constant 2.500000e-03 : f32
    %17 = vector.broadcast %cst_13 : f32 to vector<8x1xf32>
    %18 = arith.mulf %16, %17 : vector<8x1xf32>
    %19 = arith.mulf %13, %13 : vector<8x1xf32>
    %20 = arith.subf %18, %19 : vector<8x1xf32>
    %cst_14 = arith.constant 0.000000e+00 : f32
    %21 = vector.broadcast %cst_14 : f32 to vector<8x1xf32>
    %22 = arith.maximumf %20, %21 : vector<8x1xf32>
    %23 = vector.broadcast %13 : vector<8x1xf32> to vector<8x512xf32>
    %24 = arith.subf %9, %23 : vector<8x512xf32>
    %cst_15 = arith.constant 9.99999974E-6 : f32
    %25 = vector.broadcast %cst_15 : f32 to vector<8x1xf32>
    %26 = arith.addf %22, %25 : vector<8x1xf32>
    %27 = math.rsqrt %26 : vector<8x1xf32>
    %28 = vector.broadcast %27 : vector<8x1xf32> to vector<8x512xf32>
    %29 = arith.mulf %24, %28 : vector<8x512xf32>
    %c1 = arith.constant 1 : index
    %c0_16 = arith.constant 0 : index
    %30 = vector.load %arg5[%c1, %c0_16] : memref<8x512xf32, #tpu.memory_space<vmem>>, vector<1x512xf32>
    %31 = vector.broadcast %30 : vector<1x512xf32> to vector<8x512xf32>
    %32 = arith.mulf %29, %31 : vector<8x512xf32>
    %c2 = arith.constant 2 : index
    %c0_17 = arith.constant 0 : index
    %33 = vector.load %arg5[%c2, %c0_17] : memref<8x512xf32, #tpu.memory_space<vmem>>, vector<1x512xf32>
    %34 = vector.broadcast %33 : vector<1x512xf32> to vector<8x512xf32>
    %35 = arith.addf %32, %34 : vector<8x512xf32>
    %cst_18 = arith.constant 0.000000e+00 : f32
    %36 = vector.broadcast %cst_18 : f32 to vector<8x512xf32>
    %37 = arith.maximumf %35, %36 : vector<8x512xf32>
    %38 = arith.truncf %37 : vector<8x512xf32> to vector<8x512xbf16>
    %c0_19 = arith.constant 0 : index
    %c0_20 = arith.constant 0 : index
    %39 = vector.load %arg6[%c0_19, %c0_20] : memref<512x384xbf16, #tpu.memory_space<vmem>>, vector<512x384xbf16>
    %cst_21 = arith.constant dense<0.000000e+00> : vector<8x384xf32>
    %40 = tpu.matmul %38, %39, %cst_21 {dimension_numbers = #tpu.dot_dimension_numbers<[1], [0], [0], [1], [0, 0, 1, 1], [], []>} : vector<8x512xbf16>, vector<512x384xbf16>, vector<8x384xf32> -> vector<8x384xf32>
    %c0_22 = arith.constant 0 : index
    %c0_23 = arith.constant 0 : index
    %41 = vector.load %arg7[%c0_22, %c0_23] : memref<8x384xf32, #tpu.memory_space<vmem>>, vector<1x384xf32>
    %42 = vector.broadcast %41 : vector<1x384xf32> to vector<8x384xf32>
    %43 = arith.addf %40, %42 : vector<8x384xf32>
    %cst_24 = arith.constant dense<0.000000e+00> : vector<8xf32>
    %44 = vector.multi_reduction <add>, %43, %cst_24 [1] : vector<8x384xf32> to vector<8xf32>
    %45 = vector.shape_cast %44 : vector<8xf32> to vector<8x1xf32>
    %cst_25 = arith.constant 0.00333333341 : f32
    %46 = vector.broadcast %cst_25 : f32 to vector<8x1xf32>
    %47 = arith.mulf %45, %46 : vector<8x1xf32>
    %48 = arith.mulf %43, %43 : vector<8x384xf32>
    %cst_26 = arith.constant dense<0.000000e+00> : vector<8xf32>
    %49 = vector.multi_reduction <add>, %48, %cst_26 [1] : vector<8x384xf32> to vector<8xf32>
    %50 = vector.shape_cast %49 : vector<8xf32> to vector<8x1xf32>
    %cst_27 = arith.constant 0.00333333341 : f32
    %51 = vector.broadcast %cst_27 : f32 to vector<8x1xf32>
    %52 = arith.mulf %50, %51 : vector<8x1xf32>
    %53 = arith.mulf %47, %47 : vector<8x1xf32>
    %54 = arith.subf %52, %53 : vector<8x1xf32>
    %cst_28 = arith.constant 0.000000e+00 : f32
    %55 = vector.broadcast %cst_28 : f32 to vector<8x1xf32>
    %56 = arith.maximumf %54, %55 : vector<8x1xf32>
    %57 = vector.broadcast %47 : vector<8x1xf32> to vector<8x384xf32>
    %58 = arith.subf %43, %57 : vector<8x384xf32>
    %cst_29 = arith.constant 9.99999974E-6 : f32
    %59 = vector.broadcast %cst_29 : f32 to vector<8x1xf32>
    %60 = arith.addf %56, %59 : vector<8x1xf32>
    %61 = math.rsqrt %60 : vector<8x1xf32>
    %62 = vector.broadcast %61 : vector<8x1xf32> to vector<8x384xf32>
    %63 = arith.mulf %58, %62 : vector<8x384xf32>
    %c1_30 = arith.constant 1 : index
    %c0_31 = arith.constant 0 : index
    %64 = vector.load %arg7[%c1_30, %c0_31] : memref<8x384xf32, #tpu.memory_space<vmem>>, vector<1x384xf32>
    %65 = vector.broadcast %64 : vector<1x384xf32> to vector<8x384xf32>
    %66 = arith.mulf %63, %65 : vector<8x384xf32>
    %c2_32 = arith.constant 2 : index
    %c0_33 = arith.constant 0 : index
    %67 = vector.load %arg7[%c2_32, %c0_33] : memref<8x384xf32, #tpu.memory_space<vmem>>, vector<1x384xf32>
    %68 = vector.broadcast %67 : vector<1x384xf32> to vector<8x384xf32>
    %69 = arith.addf %66, %68 : vector<8x384xf32>
    %cst_34 = arith.constant 0.000000e+00 : f32
    %70 = vector.broadcast %cst_34 : f32 to vector<8x384xf32>
    %71 = arith.maximumf %69, %70 : vector<8x384xf32>
    %c3 = arith.constant 3 : index
    %c0_35 = arith.constant 0 : index
    %72 = vector.load %arg7[%c3, %c0_35] : memref<8x384xf32, #tpu.memory_space<vmem>>, vector<1x384xf32>
    %c4 = arith.constant 4 : index
    %c0_36 = arith.constant 0 : index
    %73 = vector.load %arg7[%c4, %c0_36] : memref<8x384xf32, #tpu.memory_space<vmem>>, vector<1x1xf32>
    %74 = vector.broadcast %72 : vector<1x384xf32> to vector<8x384xf32>
    %75 = arith.mulf %71, %74 : vector<8x384xf32>
    %cst_37 = arith.constant dense<0.000000e+00> : vector<8xf32>
    %76 = vector.multi_reduction <add>, %75, %cst_37 [1] : vector<8x384xf32> to vector<8xf32>
    %77 = vector.shape_cast %76 : vector<8xf32> to vector<8x1xf32>
    %78 = vector.broadcast %73 : vector<1x1xf32> to vector<8x1xf32>
    %79 = arith.addf %77, %78 : vector<8x1xf32>
    %c0_38 = arith.constant 0 : index
    %c0_39 = arith.constant 0 : index
    %80 = vector.load %arg8[%c0_38, %c0_39] : memref<8x1xf32, #tpu.memory_space<vmem>>, vector<8x1xf32>
    tpu.vector_store %arg8[%c0_38, %c0_39], %79 {strides = array<i32>} : memref<8x1xf32, #tpu.memory_space<vmem>>, vector<8x1xf32>,
    return
  }
  func.func @transform_0(%arg0: i32) -> (i32, i32) {
    %c0_i32 = arith.constant 0 : i32
    %c0_i32_0 = arith.constant 0 : i32
    return %arg0, %c0_i32 : i32, i32
  }
  func.func @transform_1(%arg0: i32) -> (i32, i32) {
    %c0_i32 = arith.constant 0 : i32
    %c0_i32_0 = arith.constant 0 : i32
    return %arg0, %c0_i32 : i32, i32
  }
  func.func @transform_2(%arg0: i32) -> (i32, i32) {
    %c0_i32 = arith.constant 0 : i32
    %c0_i32_0 = arith.constant 0 : i32
    %c0_i32_1 = arith.constant 0 : i32
    return %c0_i32, %c0_i32_0 : i32, i32
  }
  func.func @transform_3(%arg0: i32) -> (i32, i32) {
    %c0_i32 = arith.constant 0 : i32
    %c0_i32_0 = arith.constant 0 : i32
    %c0_i32_1 = arith.constant 0 : i32
    return %c0_i32, %c0_i32_0 : i32, i32
  }
  func.func @transform_4(%arg0: i32) -> (i32, i32) {
    %c0_i32 = arith.constant 0 : i32
    %c0_i32_0 = arith.constant 0 : i32
    %c0_i32_1 = arith.constant 0 : i32
    return %c0_i32, %c0_i32_0 : i32, i32
  }
  func.func @transform_5(%arg0: i32) -> (i32, i32) {
    %c0_i32 = arith.constant 0 : i32
    %c0_i32_0 = arith.constant 0 : i32
    %c0_i32_1 = arith.constant 0 : i32
    return %c0_i32, %c0_i32_0 : i32, i32
  }
  func.func @transform_6(%arg0: i32) -> (i32, i32) {
    %c0_i32 = arith.constant 0 : i32
    %c0_i32_0 = arith.constant 0 : i32
    %c0_i32_1 = arith.constant 0 : i32
    return %c0_i32, %c0_i32_0 : i32, i32
  }
  func.func @transform_7(%arg0: i32) -> (i32, i32) {
    %c0_i32 = arith.constant 0 : i32
    %c0_i32_0 = arith.constant 0 : i32
    return %arg0, %c0_i32 : i32, i32
  }
}

</mosaic_0001>

<bundles_post_ra>
// kernel: tpu_custom_call.1
= control target key start
LH: loop header
LB: loop body
LE: loop exit
PB: predicated region body
PF: predicated region fallthrough
CT: control target
= control target key end

     0   :  { %12 = vsyncpa [#allocation3], 0  ;;  %s1981_s0 = inlined_call_operand.vmem [shape: bf16[8,12], index: 0, kind: input, shape index: {}]   ;;  %s1982_s1 = inlined_call_operand.vmem [shape: bf16[8,4], index: 1, kind: input, shape index: {}]   ;;  %s1983_s2 = inlined_call_operand.hbm [shape: bf16[12,512], index: 2, kind: input, shape index: {}]   ;;  %s1984_s3 = inlined_call_operand.hbm [shape: bf16[4,512], index: 3, kind: input, shape index: {}]   ;;  %s1985_s4 = inlined_call_operand.hbm [shape: f32[8,512], index: 4, kind: input, shape index: {}]   ;;  %s1986_s5 = inlined_call_operand.hbm [shape: bf16[512,384], index: 5, kind: input, shape index: {}]   ;;  %s1987_s6 = inlined_call_operand.vmem [shape: f32[8,384], index: 6, kind: input, shape index: {}]   ;;  %s1988_s7 = inlined_call_operand.vmem [shape: f32[8,1], index: 7, kind: output, shape index: {}]  }
   0x1   :  { %13 = vsyncpa [#allocation5], 0 }
   0x2   :  { %14 = vsyncpa [#allocation8], 0  ;;  %s1762_s24 = smov [#allocation4]   ;;  %s1763_s26 = smov [#allocation2]  }
   0x3   :  { %s37_s25 = sshll.u32 %s1762_s24, 4  ;;  %s24_s27 = sshll.u32 %s1763_s26, 4  ;;  %s38_s25 = int_to_ptr.vmem [resolvable:$true] %s37_s25  ;;  %s1812_s27 = int_to_ptr.vmem [resolvable:$true] %s24_s27 }
   0x4   :  { %s1668_s30 = scalar_lea.hbm %s1984_s3, 128 }
   0x5   :  { %p1669_p0 = scmp.ne.s32.totalorder %s1984_s3, %s1668_s30  ;;  %p1672_p1 = scmp.lt.u32.totalorder %s1668_s30, %s1984_s3 }
   0x7   :  { %p1674_p2 = pnand %p1672_p1, %p1669_p0 }
   0x9   :  { %1677 = shalt.err (!%p1674_p2)
}
   0xa   :  { %s1678_s12 = scalar_lea.vmem %s38_s25, 128  ;;  %p1683_p4 = scmp.lt.s32.totalorder %s38_s25, %s38_s25 }
   0xb   :  { %p1679_p3 = scmp.ne.s32.totalorder %s38_s25, %s1678_s12  ;;  %p1684_p5 = scmp.lt.s32.totalorder %s1678_s12, %s1678_s12 }
   0xd   :  { %p1685_p6 = por %p1684_p5, %p1683_p4 }
   0xf   :  { %p1686_p7 = pnand %p1685_p6, %p1679_p3 }
  0x11   :  { %1689 = shalt.err (!%p1686_p7)
}
  0x12   :  { %40 = dma.hbm_to_vmem [thread:$0]  %s1984_s3, 128, %s38_s25, [#allocation5]  }
  0x13   :  { %s1690_s17 = scalar_lea.hbm %s1983_s2, 512 }
  0x14   :  { %p1691_p8 = scmp.ne.s32.totalorder %s1983_s2, %s1690_s17  ;;  %p1694_p9 = scmp.lt.u32.totalorder %s1690_s17, %s1983_s2 }
  0x16   :  { %p1696_p10 = pnand %p1694_p9, %p1691_p8 }
  0x18   :  { %1699 = shalt.err (!%p1696_p10)
}
  0x19   :  { %s1700_s22 = scalar_lea.vmem %s1812_s27, 512  ;;  %p1705_p12 = scmp.lt.s32.totalorder %s1812_s27, %s1812_s27 }
  0x1a   :  { %p1701_p11 = scmp.ne.s32.totalorder %s1812_s27, %s1700_s22  ;;  %p1706_p13 = scmp.lt.s32.totalorder %s1700_s22, %s1700_s22 }
  0x1c   :  { %p1707_p0 = por %p1706_p13, %p1705_p12 }
  0x1e   :  { %p1708_p1 = pnand %p1707_p0, %p1701_p11 }
  0x20   :  { %1711 = shalt.err (!%p1708_p1)
}
  0x21   :  { %s1764_s3 = smov 256   ;;  %s1765_s23 = smov 16  }
  0x22   :  { %30 = dma.hbm_to_vmem [thread:$0]  %s1983_s2, 512, %s1812_s27, [#allocation3], %s1764_s3, %s1764_s3, %s1765_s23  }
  0x23   :  { %s1766_s26 = smov [#allocation6]   ;;  %s1767_s29 = smov [#allocation7]  }
  0x24   :  { %s47_s28 = sshll.u32 %s1766_s26, 4  ;;  %s56_s30 = sshll.u32 %s1767_s29, 4  ;;  %s48_s28 = int_to_ptr.vmem [resolvable:$true] %s47_s28  ;;  %s1843_s30 = int_to_ptr.vmem [resolvable:$true] %s56_s30 }
  0x25   :  { %s1712_s10 = scalar_lea.hbm %s1985_s4, 512 }
  0x26   :  { %p1713_p2 = scmp.ne.s32.totalorder %s1985_s4, %s1712_s10  ;;  %p1716_p3 = scmp.lt.u32.totalorder %s1712_s10, %s1985_s4 }
  0x28   :  { %p1718_p4 = pnand %p1716_p3, %p1713_p2 }
  0x2a   :  { %1721 = shalt.err (!%p1718_p4)
}
  0x2b   :  { %s1722_s2 = scalar_lea.vmem %s48_s28, 512  ;;  %p1727_p6 = scmp.lt.s32.totalorder %s48_s28, %s48_s28 }
  0x2c   :  { %p1723_p5 = scmp.ne.s32.totalorder %s48_s28, %s1722_s2  ;;  %p1728_p7 = scmp.lt.s32.totalorder %s1722_s2, %s1722_s2 }
  0x2e   :  { %p1729_p8 = por %p1728_p7, %p1727_p6 }
  0x30   :  { %p1730_p9 = pnand %p1729_p8, %p1723_p5 }
  0x32   :  { %1733 = shalt.err (!%p1730_p9)
}
  0x33   :  { %50 = dma.hbm_to_vmem [thread:$0]  %s1985_s4, 512, %s48_s28, [#allocation5]  }
  0x34   :  { %s1734_s18 = scalar_lea.hbm %s1986_s5, 12288 }
  0x35   :  { %p1735_p10 = scmp.ne.s32.totalorder %s1986_s5, %s1734_s18  ;;  %p1738_p11 = scmp.lt.u32.totalorder %s1734_s18, %s1986_s5 }
  0x37   :  { %p1740_p12 = pnand %p1738_p11, %p1735_p10 }
  0x39   :  { %1743 = shalt.err (!%p1740_p12)
}
  0x3a   :  { %s1744_s3 = scalar_lea.vmem %s1843_s30, 12288  ;;  %p1749_p0 = scmp.lt.s32.totalorder %s1843_s30, %s1843_s30 }
  0x3b   :  { %p1745_p13 = scmp.ne.s32.totalorder %s1843_s30, %s1744_s3  ;;  %p1750_p1 = scmp.lt.s32.totalorder %s1744_s3, %s1744_s3 }
  0x3d   :  { %p1751_p2 = por %p1750_p1, %p1749_p0 }
  0x3f   :  { %p1752_p3 = pnand %p1751_p2, %p1745_p13 }
  0x41   :  { %1755 = shalt.err (!%p1752_p3)
}
  0x42   :  { %s1768_s4 = smov 192   ;;  %s1769_s23 = smov 12  }
  0x43   :  { %62 = dma.hbm_to_vmem [thread:$0]  %s1986_s5, 12288, %s1843_s30, [#allocation8], %s1768_s4, %s1768_s4, %s1769_s23  }
  0x44   :  { %1756 = dma.done.wait [#allocation3], 512  }
  0x45   :  { %1757 = vsyncadd [#allocation3], 4294966784 }
  0x46   :  { %1758 = dma.done.wait [#allocation5], 640  }
  0x47   :  { %1759 = vsyncadd [#allocation5], 4294966656 }
  0x48   :  { %1760 = dma.done.wait [#allocation8], 12288  }
  0x49   :  { %1761 = vsyncadd [#allocation8], 4294955008  ;;  %v90_v0 = vlaneseq  ;;  %v1770_v1 = vmov 1983009808   ;;  %v1771_v3 = vmov 0   ;;  %v84_v7 = vld [vmem:[#allocation4] sm:$0xff] }
  0x4a   :  { %v88_v2 = vunpack.c.l.s4 %v1770_v1  ;;  %152 = vmatprep.mubr.bf16.mxu1 %v1771_v3  ;;  %vm107_vm0 = vcmask 1041408   ;;  %v86_v8 = vcombine.high %v84_v7, %v84_v7  ;;  %v79_v13 = vld [vmem:[%s1982_s1] sm:$0xf]  ;;  %v1530_v15 = vld [vmem:[#allocation2 + $0x4] ss:$16 sps:$4 sm:$0x3f]  }
  0x4b   :  { %v1874_v4 = vshrl.u32 %v90_v0, 7  ;;  %vm103_vm1 = vcmask 31744   ;;  %vm222_vm2 = vcmask 1045504   ;;  %v1532_v17 = vld [vmem:[#allocation2] ss:$16 sps:$4 sm:$0x3f]  }
  0x4c   :  { %v89_v5 = vunpack.c.0.s8 %v88_v2  ;;  %v1533_v18 = vld [vmem:[#allocation2 + $0xc] ss:$16 sps:$4 sm:$0x3f]   ;;  %v224_v19 = vsel %vm222_vm2, %v1532_v17, 0  ;;  %v78_v21 = vld [vmem:[%s1981_s0] sm:$0xf] }
  0x4d   :  { %v1535_v20 = vld [vmem:[#allocation2 + $0x8] ss:$16 sps:$4 sm:$0x3f]   ;;  %vm218_vm3 = vcmask 97280   ;;  %v1539_v25 = vld [vmem:[#allocation7 + $0x1c] ss:$12 sps:$4 sm:$0xff]  }
  0x4e   :  { %v92_v6 = vsub.s32 %v89_v5, %v1874_v4  ;;  %v230_v22 = vsel %vm222_vm2, %v1535_v20, 0  ;;  %v1536_v23 = vld [vmem:[#allocation7 + $0x4] ss:$12 sps:$4 sm:$0xff]   ;;  %v1538_v24 = vld [vmem:[#allocation7] ss:$12 sps:$4 sm:$0xff]   ;;  %v1884_v47 = vsub.s32 0, %v1874_v4 }
  0x4f   :  { %1091 = vmatprep.subr.bf16.mxu0 %v1536_v23  ;;  %v1541_v26 = vld [vmem:[#allocation7 + $0x18] ss:$12 sps:$4 sm:$0xff]   ;;  %v1542_v27 = vld [vmem:[#allocation7 + $0x34] ss:$12 sps:$4 sm:$0xff]   ;;  %v1544_v28 = vld [vmem:[#allocation7 + $0x30] ss:$12 sps:$4 sm:$0xff]  }
  0x50   :  { %v93_v9 = vrot.slane %v84_v7, %v92_v6  ;;  %v100_v10 = vrot.slane %v86_v8, %v92_v6  ;;  %1092 = vmatpush1.bf16.msra.mxu0 %v1538_v24  ;;  %v1545_v29 = vld [vmem:[#allocation7 + $0x4c] ss:$12 sps:$4 sm:$0xff]   ;;  %v1547_v30 = vld [vmem:[#allocation7 + $0x48] ss:$12 sps:$4 sm:$0xff]   ;;  %v1548_v31 = vld [vmem:[#allocation7 + $0x64] ss:$12 sps:$4 sm:$0xff]  }
  0x51   :  { %1093 = vmatprep.subr.bf16.mxu0 %v1539_v25  ;;  %v1550_v32 = vld [vmem:[#allocation7 + $0x60] ss:$12 sps:$4 sm:$0xff]   ;;  %v1551_v33 = vld [vmem:[#allocation7 + $0x7c] ss:$12 sps:$4 sm:$0xff]   ;;  %v1553_v34 = vld [vmem:[#allocation7 + $0x78] ss:$12 sps:$4 sm:$0xff]  }
  0x52   :  { %v101_v11 = vcombine.high %v93_v9, %v93_v9  ;;  %v109_v12 = vsel %vm107_vm0, %v93_v9, 0  ;;  %v102_v14 = vcombine.high %v100_v10, %v100_v10  ;;  %v115_v16 = vsel %vm107_vm0, %v100_v10, 0  ;;  %v1554_v35 = vld [vmem:[#allocation7 + $0x94] ss:$12 sps:$4 sm:$0xff]   ;;  %v1556_v36 = vld [vmem:[#allocation7 + $0x90] ss:$12 sps:$4 sm:$0xff]  }
  0x53   :  { %v1557_v37 = vld [vmem:[#allocation7 + $0xac] ss:$12 sps:$4 sm:$0xff]   ;;  %v1559_v38 = vld [vmem:[#allocation7 + $0xa8] ss:$12 sps:$4 sm:$0xff]   ;;  %v1887_v48 = vsub.s32 1, %v1874_v4  ;;  %v1892_v58 = vsub.s32 2, %v1874_v4 }
  0x54   :  { %1358 = vmatprep.subr.msk.bf16.mxu1 %vm107_vm0, %v101_v11  ;;  %1094 = vmatpush1.bf16.msra.mxu0 %v1541_v26  ;;  %v317_v49 = vld [vmem:[#allocation6] ss:$8 sm:$0xf]  ;;  %v1895_v59 = vsub.s32 3, %v1874_v4  ;;  %vm1349_vm4 = vcmask 7168  }
  0x55   :  { %121 = vmatpush1.bf16.msra.mxu1 %v109_v12  ;;  %1095 = vmatprep.subr.bf16.mxu0 %v1542_v27  ;;  %v322_v52 = vrot.slane %v317_v49, %v1884_v47  ;;  %v326_v54 = vrot.slane %v317_v49, %v1887_v48  ;;  %v330_v62 = vrot.slane %v317_v49, %v1892_v58  ;;  %v1563_v20 = vld [vmem:[#allocation7 + $0xc0] ss:$12 sps:$4 sm:$0xff]   ;;  %v1568_v24 = vld [vmem:[#allocation7 + $0xd8] ss:$12 sps:$4 sm:$0xff]  }
  0x56   :  { %1360 = vmatprep.subr.msk.bf16.mxu1 %vm107_vm0, %v102_v14  ;;  %v334_v0 = vrot.slane %v317_v49, %v1895_v59  ;;  %v1567_v23 = vld [vmem:[#allocation7 + $0xe0] ss:$12 sps:$4 sm:$0xff]   ;;  %v1572_v27 = vld [vmem:[#allocation7 + $0xf8] ss:$12 sps:$4 sm:$0xff]   ;;  %v1597_v49 = vld [vmem:[#allocation7 + $0x170] ss:$12 sps:$4 sm:$0xff]  }
  0x57   :  { %v1569_v25 = vld [vmem:[#allocation7 + $0x20] ss:$12 sps:$4 sm:$0xff]  }
  0x58   :  { %1359 = vmatmul.mubr.msk.bf16.vlgmr.msra.gmra.mrb[0].mxu1 %vm103_vm1, %v79_v13  ;;  %1096 = vmatpush1.bf16.msra.mxu0 %v1544_v28  ;;  %v1570_v26 = vld [vmem:[#allocation7 + $0xf4] ss:$12 sps:$4 sm:$0xff]   ;;  %v1573_v28 = vld [vmem:[#allocation7 + $0xf0] ss:$12 sps:$4 sm:$0xff]  }
  0x59   :  { %162 = vmatpush1.bf16.msra.mxu1 %v115_v16  ;;  %193 = vmatprep.mubr.bf16.mxu1 %v1771_v3 }
  0x5a   :  { %1366 = vmatprep.subr.msk.bf16.mxu1 %vm222_vm2, %v1530_v15  ;;  %1097 = vmatprep.subr.bf16.mxu0 %v1545_v29  ;;  %v1574_v29 = vld [vmem:[#allocation7 + $0x38] ss:$12 sps:$4 sm:$0xff]  }
  0x5c   :  { %1098 = vmatpush1.bf16.msra.mxu0 %v1547_v30  ;;  %v1575_v30 = vld [vmem:[#allocation7 + $0x10c] ss:$12 sps:$4 sm:$0xff]  }
  0x5d   :  { %1099 = vmatprep.subr.bf16.mxu0 %v1548_v31  ;;  %v1577_v31 = vld [vmem:[#allocation7 + $0x110] ss:$12 sps:$4 sm:$0xff]  }
  0x60   :  { %1361 = vmatmul.mubr.msk.bf16.vlgmr.msra.gmra.mrb[4].mxu1 %vm103_vm1, %v79_v13  ;;  %1100 = vmatpush1.bf16.msra.mxu0 %v1550_v32  ;;  %v1578_v32 = vld [vmem:[#allocation7 + $0x108] ss:$12 sps:$4 sm:$0xff]  }
  0x61   :  { %236 = vmatpush1.bf16.msra.mxu1 %v224_v19  ;;  %267 = vmatprep.mubr.bf16.mxu1 %v1771_v3  ;;  %v1562_v19 = vld [vmem:[#allocation7 + $0xc8] ss:$12 sps:$4 sm:$0xff]  }
  0x62   :  { %1368 = vmatprep.subr.msk.bf16.mxu1 %vm222_vm2, %v1533_v18  ;;  %1101 = vmatprep.subr.bf16.mxu0 %v1551_v33  ;;  %v1560_v18 = vld [vmem:[#allocation7 + $0xc4] ss:$12 sps:$4 sm:$0xff]  }
  0x63   :  { %v1579_v33 = vld [vmem:[#allocation7 + $0x50] ss:$12 sps:$4 sm:$0xff]  }
  0x64   :  { %1102 = vmatpush1.bf16.msra.mxu0 %v1553_v34  ;;  %v1580_v34 = vld [vmem:[#allocation7 + $0x124] ss:$12 sps:$4 sm:$0xff]  }
  0x65   :  { %1103 = vmatprep.subr.bf16.mxu0 %v1554_v35  ;;  %v1582_v35 = vld [vmem:[#allocation7 + $0x128] ss:$12 sps:$4 sm:$0xff]  }
  0x68   :  { %1367 = vmatmul.mubr.msk.bf16.vlgmr.msra.gmra.mrb[8].mxu1 %vm218_vm3, %v78_v21  ;;  %1104 = vmatpush1.bf16.msra.mxu0 %v1556_v36  ;;  %v1583_v36 = vld [vmem:[#allocation7 + $0x120] ss:$12 sps:$4 sm:$0xff]  }
  0x69   :  { %277 = vmatpush1.bf16.msra.mxu1 %v230_v22  ;;  %308 = vmatprep.mubr.bf16.mxu1 %v1771_v3  ;;  %v1565_v22 = vld [vmem:[#allocation7 + $0xdc] ss:$12 sps:$4 sm:$0xff]  }
  0x6a   :  { %1105 = vmatprep.subr.bf16.mxu0 %v1557_v37  ;;  %1469 = vmatprep.subr.bf16.mxu1 %v1562_v19  ;;  %v1584_v37 = vld [vmem:[#allocation7 + $0x68] ss:$12 sps:$4 sm:$0xff]  }
  0x6c   :  { %1106 = vmatpush1.bf16.msra.mxu0 %v1559_v38  ;;  %v1585_v38 = vld [vmem:[#allocation7 + $0x13c] ss:$12 sps:$4 sm:$0xff]  }
  0x6d   :  { %1107 = vmatprep.subr.bf16.mxu0 %v1560_v18 }
  0x70   :  { %1369 = vmatmul.mubr.msk.bf16.vlgmr.msra.gmra.mrb[12].mxu1 %vm218_vm3, %v78_v21  ;;  %v1564_v21 = vld [vmem:[#allocation7 + $0x8] ss:$12 sps:$4 sm:$0xff]   ;;  %1108 = vmatpush1.bf16.msra.mxu0 %v1563_v20 }
  0x71   :  { %1470 = vmatpush3.bf16.msra.mxu1 %v1564_v21  ;;  %1109 = vmatprep.subr.bf16.mxu0 %v1565_v22 }
  0x72   :  { %1471 = vmatprep.subr.bf16.mxu1 %v1567_v23 }
  0x74   :  { %1110 = vmatpush1.bf16.msra.mxu0 %v1568_v24 }
  0x75   :  { %1472 = vmatpush3.bf16.msra.mxu1 %v1569_v25  ;;  %1111 = vmatprep.subr.bf16.mxu0 %v1570_v26  ;;  %v1600_v26 = vld [vmem:[#allocation7 + $0x180] ss:$12 sps:$4 sm:$0xff]  }
  0x76   :  { %1473 = vmatprep.subr.bf16.mxu1 %v1572_v27 }
  0x78   :  { %1112 = vmatpush1.bf16.msra.mxu0 %v1573_v28  ;;  %v1604_v28 = vld [vmem:[#allocation7 + $0x188] ss:$12 sps:$4 sm:$0xff]  }
  0x79   :  { %1474 = vmatpush3.bf16.msra.mxu1 %v1574_v29  ;;  %1113 = vmatprep.subr.bf16.mxu0 %v1575_v30  ;;  %v1607_v29 = vld [vmem:[#allocation7 + $0x19c] ss:$12 sps:$4 sm:$0xff]   ;;  %v1608_v30 = vld [vmem:[#allocation7 + $0x260] ss:$12 sps:$4 sm:$0xff]  }
  0x7a   :  { %1475 = vmatprep.subr.bf16.mxu1 %v1577_v31  ;;  %v1605_v31 = vld [vmem:[#allocation7 + $0x198] ss:$12 sps:$4 sm:$0xff]  }
  0x7c   :  { %1114 = vmatpush1.bf16.msra.mxu0 %v1578_v32  ;;  %v1609_v32 = vld [vmem:[#allocation7 + $0x1a0] ss:$12 sps:$4 sm:$0xff]  }
  0x7d   :  { %1476 = vmatpush3.bf16.msra.mxu1 %v1579_v33  ;;  %1115 = vmatprep.subr.bf16.mxu0 %v1580_v34  ;;  %v1612_v33 = vld [vmem:[#allocation7 + $0x1b4] ss:$12 sps:$4 sm:$0xff]   ;;  %v1613_v34 = vld [vmem:[#allocation7 + $0x278] ss:$12 sps:$4 sm:$0xff]  }
  0x7e   :  { %1477 = vmatprep.subr.bf16.mxu1 %v1582_v35  ;;  %v1610_v35 = vld [vmem:[#allocation7 + $0x1b0] ss:$12 sps:$4 sm:$0xff]  }
  0x80   :  { %1116 = vmatpush1.bf16.msra.mxu0 %v1583_v36  ;;  %v1614_v36 = vld [vmem:[#allocation7 + $0x1b8] ss:$12 sps:$4 sm:$0xff]  }
  0x81   :  { %1478 = vmatpush3.bf16.msra.mxu1 %v1584_v37  ;;  %1117 = vmatprep.subr.bf16.mxu0 %v1585_v38  ;;  %v1617_v37 = vld [vmem:[#allocation7 + $0x1cc] ss:$12 sps:$4 sm:$0xff]   ;;  %v1618_v38 = vld [vmem:[#allocation7 + $0x290] ss:$12 sps:$4 sm:$0xff]  }
 0x12b   :  { %v154_v39 = vpop.f32.mrb[0].mxu1 }
 0x12c   :  { %v156_v40 = vpop.f32.mrb[1].mxu1 }
 0x12d   :  { %v158_v41 = vpop.f32.mrb[2].mxu1 }
 0x12e   :  { %v159_v42 = vpop.f32.mrb[3].mxu1  ;;  %v1589_v41 = vld [vmem:[#allocation7 + $0x80] ss:$12 sps:$4 sm:$0xff]  }
 0x12f   :  { %v1590_v42 = vld [vmem:[#allocation7 + $0x154] ss:$12 sps:$4 sm:$0xff]  }
 0x133   :  { %v195_v43 = vpop.f32.mrb[4].mxu1 }
 0x134   :  { %v197_v44 = vpop.f32.mrb[5].mxu1 }
 0x135   :  { %v199_v45 = vpop.f32.mrb[6].mxu1 }
 0x136   :  { %v200_v46 = vpop.f32.mrb[7].mxu1  ;;  %v1594_v45 = vld [vmem:[#allocation7 + $0x98] ss:$12 sps:$4 sm:$0xff]  }
 0x137   :  { %v1595_v46 = vld [vmem:[#allocation7 + $0x16c] ss:$12 sps:$4 sm:$0xff]  }
 0x13b   :  { %v269_v50 = vpop.f32.mrb[8].mxu1 }
 0x13c   :  { %v270_v51 = vadd.f32 %v269_v50, %v154_v39  ;;  %v271_v53 = vpop.f32.mrb[9].mxu1  ;;  %v1587_v39 = vld [vmem:[#allocation7 + $0x140] ss:$12 sps:$4 sm:$0xff]   ;;  %v1598_v50 = vld [vmem:[#allocation7 + $0x168] ss:$12 sps:$4 sm:$0xff]  }
 0x13d   :  { %v272_v55 = vadd.f32 %v271_v53, %v156_v40  ;;  %v273_v56 = vpop.f32.mrb[10].mxu1  ;;  %v1588_v40 = vld [vmem:[#allocation7 + $0x138] ss:$12 sps:$4 sm:$0xff]   ;;  %1479 = vmatprep.subr.bf16.mxu1 %v1587_v39  ;;  %v1603_v53 = vld [vmem:[#allocation7 + $0x248] ss:$12 sps:$4 sm:$0xff]  }
 0x13e   :  { %v274_v57 = vpop.f32.mrb[11].mxu1  ;;  %v1897_v60 = vadd.f32 %v322_v52, %v270_v51  ;;  %1118 = vmatpush1.bf16.msra.mxu0 %v1588_v40  ;;  %1480 = vmatpush3.bf16.msra.mxu1 %v1589_v41  ;;  %v1599_v51 = vld [vmem:[#allocation7 + $0xb0] ss:$12 sps:$4 sm:$0xff]   ;;  %v1615_v39 = vld [vmem:[#allocation7 + $0x1c8] ss:$12 sps:$4 sm:$0xff]  }
 0x13f   :  { %v1899_v61 = vadd.f32 %v326_v54, %v272_v55  ;;  %1119 = vmatprep.subr.bf16.mxu0 %v1590_v42  ;;  %v1602_v52 = vld [vmem:[#allocation7 + $0x184] ss:$12 sps:$4 sm:$0xff]   ;;  %v1623_v42 = vld [vmem:[#allocation7 + $0x2a8] ss:$12 sps:$4 sm:$0xff]  }
 0x140   :  { %v349_v1 = vmul.f32 %v1897_v60, %v1897_v60  ;;  %v1619_v40 = vld [vmem:[#allocation7 + $0x1d0] ss:$12 sps:$4 sm:$0xff]  }
 0x141   :  { %v350_v2 = vmul.f32 %v1899_v61, %v1899_v61  ;;  %v343_v9 = vadd.f32 %v1899_v61, %v1897_v60  ;;  %v1622_v41 = vld [vmem:[#allocation7 + $0x1e4] ss:$12 sps:$4 sm:$0xff]  }
 0x143   :  { %v310_v63 = vpop.f32.mrb[12].mxu1  ;;  %v353_v13 = vadd.f32 %v350_v2, %v349_v1  ;;  %v1923_v2 = vld [vmem:[#allocation6 + $0x1] ss:$8 sm:$0xf] }
 0x144   :  { %v311_v3 = vadd.f32 %v310_v63, %v195_v43  ;;  %v312_v5 = vpop.f32.mrb[13].mxu1  ;;  %v1592_v43 = vld [vmem:[#allocation7 + $0x158] ss:$12 sps:$4 sm:$0xff]  }
 0x145   :  { %v313_v6 = vadd.f32 %v312_v5, %v197_v44  ;;  %v314_v4 = vpop.f32.mrb[14].mxu1  ;;  %v1593_v44 = vld [vmem:[#allocation7 + $0x150] ss:$12 sps:$4 sm:$0xff]   ;;  %1481 = vmatprep.subr.bf16.mxu1 %v1592_v43  ;;  %v382_v5 = vrot.slane %v1923_v2, %v1887_v48 }
 0x146   :  { %v1907_v7 = vadd.f32 %v330_v62, %v311_v3  ;;  %v315_v8 = vpop.f32.mrb[15].mxu1  ;;  %1120 = vmatpush1.bf16.msra.mxu0 %v1593_v44  ;;  %1482 = vmatpush3.bf16.msra.mxu1 %v1594_v45  ;;  %v1925_v3 = vld [vmem:[#allocation6 + $0x2] ss:$8 sm:$0xf] }
 0x147   :  { %v1911_v10 = vadd.f32 %v334_v0, %v313_v6  ;;  %1121 = vmatprep.subr.bf16.mxu0 %v1595_v46  ;;  %1483 = vmatprep.subr.bf16.mxu1 %v1597_v49  ;;  %v378_v6 = vrot.slane %v1923_v2, %v1884_v47  ;;  %v1620_v44 = vld [vmem:[#allocation7 + $0x1e0] ss:$12 sps:$4 sm:$0xff]   ;;  %v1624_v45 = vld [vmem:[#allocation7 + $0x1e8] ss:$12 sps:$4 sm:$0xff]  }
 0x148   :  { %v344_v11 = vadd.f32 %v343_v9, %v1907_v7  ;;  %v351_v12 = vmul.f32 %v1907_v7, %v1907_v7  ;;  %v1627_v46 = vld [vmem:[#allocation7 + $0x1fc] ss:$12 sps:$4 sm:$0xff]   ;;  %v1628_v49 = vld [vmem:[#allocation7 + $0x2c0] ss:$12 sps:$4 sm:$0xff]  }
 0x149   :  { %v352_v15 = vmul.f32 %v1911_v10, %v1911_v10 }
 0x14a   :  { %v345_v14 = vadd.f32 %v344_v11, %v1911_v10  ;;  %v354_v16 = vadd.f32 %v353_v13, %v351_v12  ;;  %1122 = vmatpush1.bf16.msra.mxu0 %v1598_v50  ;;  %1484 = vmatpush3.bf16.msra.mxu1 %v1599_v51  ;;  %v390_v11 = vrot.slane %v1923_v2, %v1895_v59 }
 0x14b   :  { %1132 = vmatprep.subr.bf16.mxu0 %v1602_v52  ;;  %1491 = vmatprep.subr.bf16.mxu1 %v1603_v53  ;;  %v409_v13 = vrot.slane %v1925_v3, %v1887_v48  ;;  %v386_v51 = vrot.slane %v1923_v2, %v1892_v58  ;;  %v1625_v52 = vld [vmem:[#allocation7 + $0x1f8] ss:$12 sps:$4 sm:$0xff]   ;;  %v1629_v53 = vld [vmem:[#allocation7 + $0x200] ss:$12 sps:$4 sm:$0xff]   ;;  %v1635_v2 = vld [vmem:[#allocation7 + $0x228] ss:$12 sps:$4 sm:$0xff]  }
 0x14c   :  { %346 = vadd.xlane.f32.xlu0 %v345_v14  ;;  %v355_v17 = vadd.f32 %v354_v16, %v352_v15  ;;  %v405_v14 = vrot.slane %v1925_v3, %v1884_v47 }
 0x150   :  { %356 = vadd.xlane.f32.xlu0 %v355_v17 }
 0x1d9   :  { %v347_v54 = vpop.xlane.xlu0 %346 }
 0x1da   :  { %v1919_v55 = vmul.f32 0.0025, %v347_v54  ;;  %v1632_v54 = vld [vmem:[#allocation7 + $0x214] ss:$12 sps:$4 sm:$0xff]  }
 0x1dc   :  { %v359_v57 = vmul.f32 %v1919_v55, %v1919_v55  ;;  %v363_v4 = vsub.f32 %v1899_v61, %v1919_v55  ;;  %v362_v8 = vsub.f32 %v1897_v60, %v1919_v55  ;;  %v365_v9 = vsub.f32 %v1911_v10, %v1919_v55 }
 0x1dd   :  { %v357_v56 = vpop.xlane.xlu0 %356  ;;  %v417_v61 = vrot.slane %v1925_v3, %v1895_v59  ;;  %v364_v43 = vsub.f32 %v1907_v7, %v1919_v55  ;;  %v1633_v7 = vld [vmem:[#allocation7 + $0x2d8] ss:$12 sps:$4 sm:$0xff]  }
 0x1de   :  { %v358_v62 = vmul.f32 0.0025, %v357_v56  ;;  %v413_v56 = vrot.slane %v1925_v3, %v1892_v58  ;;  %v1640_v3 = vld [vmem:[#allocation7 + $0x240] ss:$12 sps:$4 sm:$0xff]  }
 0x1e0   :  { %v360_v63 = vsub.f32 %v358_v62, %v359_v57  ;;  %v1630_v57 = vld [vmem:[#allocation7 + $0x210] ss:$12 sps:$4 sm:$0xff]   ;;  %v1634_v62 = vld [vmem:[#allocation7 + $0x218] ss:$12 sps:$4 sm:$0xff]  }
 0x1e2   :  { %v361_v0 = vmax.f32 %v360_v63, 0.0  ;;  %v1637_v63 = vld [vmem:[#allocation7 + $0x22c] ss:$12 sps:$4 sm:$0xff]  }
 0x1e4   :  { %v366_v1 = vadd.f32 1e-05, %v361_v0  ;;  %v1638_v0 = vld [vmem:[#allocation7 + $0x2f0] ss:$12 sps:$4 sm:$0xff]  }
 0x1e6   :  { %1664 = vrsqrt.f32 %v366_v1 }
 0x1f0   :  { %v1665_v12 = vpop.eup %1664 }
 0x1f1   :  { %v369_v15 = vmul.f32 %v1665_v12, %v363_v4  ;;  %v368_v16 = vmul.f32 %v1665_v12, %v362_v8  ;;  %v371_v17 = vmul.f32 %v1665_v12, %v365_v9  ;;  %v370_v50 = vmul.f32 %v1665_v12, %v364_v43  ;;  %v1645_v9 = vld [vmem:[#allocation7 + $0x25c] ss:$12 sps:$4 sm:$0xff]   ;;  %v1648_v12 = vld [vmem:[#allocation7 + $0x274] ss:$12 sps:$4 sm:$0xff]  }
 0x1f3   :  { %v396_v60 = vmul.f32 %v382_v5, %v369_v15  ;;  %v395_v18 = vmul.f32 %v378_v6, %v368_v16  ;;  %v398_v19 = vmul.f32 %v390_v11, %v371_v17  ;;  %v397_v55 = vmul.f32 %v386_v51, %v370_v50  ;;  %v1639_v5 = vld [vmem:[#allocation7 + $0x230] ss:$12 sps:$4 sm:$0xff]   ;;  %v1643_v11 = vld [vmem:[#allocation7 + $0x258] ss:$12 sps:$4 sm:$0xff]   ;;  %v1649_v15 = vld [vmem:[#allocation7 + $0x288] ss:$12 sps:$4 sm:$0xff]  }
 0x1f4   :  { %v1642_v6 = vld [vmem:[#allocation7 + $0x244] ss:$12 sps:$4 sm:$0xff]   ;;  %v1652_v17 = vld [vmem:[#allocation7 + $0x2a0] ss:$12 sps:$4 sm:$0xff]  }
 0x1f5   :  { %v423_v10 = vadd.f32 %v409_v13, %v396_v60  ;;  %v422_v20 = vadd.f32 %v405_v14, %v395_v18  ;;  %v425_v21 = vadd.f32 %v417_v61, %v398_v19  ;;  %v424_v1 = vadd.f32 %v413_v56, %v397_v55  ;;  %v1646_v13 = vld [vmem:[#allocation7 + $0x270] ss:$12 sps:$4 sm:$0xff]   ;;  %v1651_v14 = vld [vmem:[#allocation7 + $0x28c] ss:$12 sps:$4 sm:$0xff]   ;;  %v1660_v18 = vld [vmem:[#allocation7 + $0x2d4] ss:$12 sps:$4 sm:$0xff]  }
 0x1f6   :  { %v1654_v16 = vld [vmem:[#allocation7 + $0x2a4] ss:$12 sps:$4 sm:$0xff]   ;;  %v1657_v61 = vld [vmem:[#allocation7 + $0x2bc] ss:$12 sps:$4 sm:$0xff]  }
 0x1f7   :  { %v427_v22 = vmax.f32 %v423_v10, 0.0  ;;  %v426_v23 = vmax.f32 %v422_v20, 0.0  ;;  %v429_v24 = vmax.f32 %v425_v21, 0.0  ;;  %v428_v4 = vmax.f32 %v424_v1, 0.0  ;;  %v1655_v60 = vld [vmem:[#allocation7 + $0x2b8] ss:$12 sps:$4 sm:$0xff]  }
 0x1f8   :  { %v1658_v19 = vld [vmem:[#allocation7 + $0x2d0] ss:$12 sps:$4 sm:$0xff]   ;;  %v1663_v10 = vld [vmem:[#allocation7 + $0x2ec] ss:$12 sps:$4 sm:$0xff]   ;;  %v1661_v20 = vld [vmem:[#allocation7 + $0x2e8] ss:$12 sps:$4 sm:$0xff]  }
 0x1f9   :  { %v431_v25 = vpack.c.bf16 %v427_v22, %v427_v22  ;;  %v430_v27 = vpack.c.bf16 %v426_v23, %v426_v23  ;;  %v433_v59 = vpack.c.bf16 %v429_v24, %v429_v24  ;;  %v432_v8 = vpack.c.bf16 %v428_v4, %v428_v4 }
 0x1fb   :  { %1123 = vmatprep.mubr.bf16.mxu0 %v431_v25  ;;  %1205 = vmatprep.mubr.bf16.mxu1 %v431_v25 }
 0x1fc   :  { %1124 = vmatmul.mubr.bf16.vlgmr.msra.gmra.mrb[0].mxu0 %v430_v27  ;;  %1206 = vmatmul.mubr.bf16.vlgmr.msra.gmra.mrb[16].mxu1 %v430_v27 }
 0x1fd   :  { %1133 = vmatpush1.bf16.msra.mxu0 %v1600_v26  ;;  %1492 = vmatpush3.bf16.msra.mxu1 %v1604_v28  ;;  %v562_v26 = vld [vmem:[%s1987_s6] ss:$8 sm:$0x7] }
 0x1fe   :  { %1164 = vmatprep.mubr.bf16.mxu0 %v433_v59  ;;  %1245 = vmatprep.mubr.bf16.mxu1 %v433_v59  ;;  %v575_v27 = vrot.slane %v562_v26, %v1892_v58 }
 0x1ff   :  { %1134 = vmatprep.subr.bf16.mxu0 %v1607_v29  ;;  %1493 = vmatprep.subr.bf16.mxu1 %v1608_v30 }
 0x201   :  { %1135 = vmatpush1.bf16.msra.mxu0 %v1605_v31  ;;  %1494 = vmatpush3.bf16.msra.mxu1 %v1609_v32 }
 0x202   :  { %1136 = vmatprep.subr.bf16.mxu0 %v1612_v33  ;;  %1495 = vmatprep.subr.bf16.mxu1 %v1613_v34  ;;  %v567_v34 = vrot.slane %v562_v26, %v1884_v47 }
 0x205   :  { %1137 = vmatpush1.bf16.msra.mxu0 %v1610_v35  ;;  %1496 = vmatpush3.bf16.msra.mxu1 %v1614_v36  ;;  %v571_v35 = vrot.slane %v562_v26, %v1887_v48 }
 0x206   :  { %1138 = vmatprep.subr.bf16.mxu0 %v1617_v37  ;;  %1497 = vmatprep.subr.bf16.mxu1 %v1618_v38 }
 0x209   :  { %1139 = vmatpush1.bf16.msra.mxu0 %v1615_v39  ;;  %1498 = vmatpush3.bf16.msra.mxu1 %v1619_v40 }
 0x20a   :  { %1140 = vmatprep.subr.bf16.mxu0 %v1622_v41  ;;  %1499 = vmatprep.subr.bf16.mxu1 %v1623_v42 }
 0x20d   :  { %1141 = vmatpush1.bf16.msra.mxu0 %v1620_v44  ;;  %1500 = vmatpush3.bf16.msra.mxu1 %v1624_v45 }
 0x20e   :  { %1142 = vmatprep.subr.bf16.mxu0 %v1627_v46  ;;  %1501 = vmatprep.subr.bf16.mxu1 %v1628_v49 }
 0x211   :  { %1143 = vmatpush1.bf16.msra.mxu0 %v1625_v52  ;;  %1502 = vmatpush3.bf16.msra.mxu1 %v1629_v53 }
 0x212   :  { %1144 = vmatprep.subr.bf16.mxu0 %v1632_v54  ;;  %1503 = vmatprep.subr.bf16.mxu1 %v1633_v7 }
 0x215   :  { %1145 = vmatpush1.bf16.msra.mxu0 %v1630_v57  ;;  %1504 = vmatpush3.bf16.msra.mxu1 %v1634_v62  ;;  %v1466_v62 = vld [vmem:[%s1987_s6 + $0x1] ss:$8 sm:$0x7] }
 0x216   :  { %1146 = vmatprep.subr.bf16.mxu0 %v1637_v63  ;;  %1505 = vmatprep.subr.bf16.mxu1 %v1638_v0  ;;  %v1467_v63 = vld [vmem:[%s1987_s6 + $0x2] ss:$8 sm:$0x7]  ;;  %v1283_v0 = vrot.slane %v1466_v62, %v1884_v47  ;;  %v1287_v1 = vrot.slane %v1466_v62, %v1887_v48  ;;  %v1291_v4 = vrot.slane %v1466_v62, %v1892_v58 }
 0x219   :  { %1147 = vmatpush1.bf16.msra.mxu0 %v1635_v2  ;;  %1506 = vmatpush3.bf16.msra.mxu1 %v1639_v5 }
 0x21a   :  { %1148 = vmatprep.subr.bf16.mxu0 %v1642_v6 }
 0x21c   :  { %1246 = vmatmul.mubr.bf16.vlgmr.msra.gmra.mrb[20].mxu1 %v432_v8 }
 0x21d   :  { %1149 = vmatpush1.bf16.msra.mxu0 %v1640_v3 }
 0x21e   :  { %1150 = vmatprep.subr.bf16.mxu0 %v1645_v9  ;;  %v1308_v9 = vrot.slane %v1467_v63, %v1887_v48 }
 0x221   :  { %1151 = vmatpush1.bf16.msra.mxu0 %v1643_v11 }
 0x222   :  { %1152 = vmatprep.subr.bf16.mxu0 %v1648_v12 }
 0x225   :  { %1153 = vmatpush1.bf16.msra.mxu0 %v1646_v13 }
 0x226   :  { %1154 = vmatprep.subr.bf16.mxu0 %v1651_v14  ;;  %v1312_v14 = vrot.slane %v1467_v63, %v1892_v58 }
 0x229   :  { %1155 = vmatpush1.bf16.msra.mxu0 %v1649_v15  ;;  %v1468_v15 = vld [vmem:[%s1987_s6 + $0x3] ss:$8 sm:$0x7] }
 0x22a   :  { %1156 = vmatprep.subr.bf16.mxu0 %v1654_v16 }
 0x22d   :  { %1157 = vmatpush1.bf16.msra.mxu0 %v1652_v17 }
 0x22e   :  { %1158 = vmatprep.subr.bf16.mxu0 %v1657_v61 }
 0x231   :  { %1159 = vmatpush1.bf16.msra.mxu0 %v1655_v60  ;;  %v1329_v60 = vrot.slane %v1468_v15, %v1884_v47 }
 0x232   :  { %1160 = vmatprep.subr.bf16.mxu0 %v1660_v18 }
 0x235   :  { %1161 = vmatpush1.bf16.msra.mxu0 %v1658_v19 }
 0x236   :  { %1162 = vmatprep.subr.bf16.mxu0 %v1663_v10 }
 0x239   :  { %1163 = vmatpush1.bf16.msra.mxu0 %v1661_v20  ;;  %v1333_v20 = vrot.slane %v1468_v15, %v1887_v48 }
 0x23c   :  { %1165 = vmatmul.mubr.bf16.vlgmr.msra.gmra.mrb[0].mxu0 %v432_v8  ;;  %v1304_v8 = vrot.slane %v1467_v63, %v1884_v47  ;;  %v1324_v47 = vld [vmem:[%s1987_s6 + $0x4] ss:$0 sm:$0xff] }
 0x2cf   :  { %v1485_v21 = vpop.f32.mrb[16].mxu1 }
 0x2d0   :  { %v1486_v22 = vpop.f32.mrb[17].mxu1 }
 0x2d1   :  { %v1487_v23 = vadd.f32 %v1486_v22, %v1485_v21  ;;  %v1488_v24 = vpop.f32.mrb[18].mxu1 }
 0x2d2   :  { %v1489_v25 = vpop.f32.mrb[19].mxu1  ;;  %v1337_v24 = vrot.slane %v1468_v15, %v1892_v58 }
 0x2d3   :  { %v1208_v30 = vadd.f32 %v1487_v23, %v575_v27 }
 0x2ef   :  { %v1507_v28 = vpop.f32.mrb[20].mxu1 }
 0x2f0   :  { %v1508_v29 = vpop.f32.mrb[21].mxu1 }
 0x2f1   :  { %v1509_v59 = vadd.f32 %v1508_v29, %v1507_v28  ;;  %v1510_v31 = vpop.f32.mrb[22].mxu1 }
 0x2f2   :  { %v1511_v32 = vpop.f32.mrb[23].mxu1 }
 0x2f3   :  { %v1248_v33 = vadd.f32 %v1509_v59, %v1208_v30 }
 0x2f5   :  { %v1260_v49 = vmul.f32 %v1248_v33, %v1248_v33 }
 0x30f   :  { %v1166_v36 = vpop.f32.mrb[0].mxu0 }
 0x310   :  { %v1513_v37 = vadd.f32 %v1166_v36, %v567_v34  ;;  %v1168_v38 = vpop.f32.mrb[1].mxu0 }
 0x311   :  { %v1514_v39 = vadd.f32 %v1168_v38, %v571_v35  ;;  %v1170_v40 = vpop.f32.mrb[2].mxu0 }
 0x312   :  { %v1258_v41 = vmul.f32 %v1513_v37, %v1513_v37  ;;  %v1171_v42 = vpop.f32.mrb[3].mxu0 }
 0x313   :  { %v1259_v43 = vmul.f32 %v1514_v39, %v1514_v39  ;;  %v1253_v44 = vadd.f32 %v1514_v39, %v1513_v37 }
 0x315   :  { %v1254_v45 = vadd.f32 %v1253_v44, %v1248_v33  ;;  %v1261_v46 = vadd.f32 %v1259_v43, %v1258_v41 }
 0x317   :  { %1255 = vadd.xlane.f32.xlu1 %v1254_v45  ;;  %v1262_v50 = vadd.f32 %v1261_v46, %v1260_v49 }
 0x31b   :  { %1263 = vadd.xlane.f32.xlu1 %v1262_v50 }
 0x3a4   :  { %v1256_v51 = vpop.xlane.xlu1 %1255 }
 0x3a5   :  { %v1257_v52 = vmul.f32 0.0033333334, %v1256_v51 }
 0x3a7   :  { %v1266_v54 = vmul.f32 %v1257_v52, %v1257_v52  ;;  %v1269_v2 = vsub.f32 %v1513_v37, %v1257_v52  ;;  %v1270_v5 = vsub.f32 %v1514_v39, %v1257_v52  ;;  %v1271_v6 = vsub.f32 %v1248_v33, %v1257_v52 }
 0x3a8   :  { %v1264_v53 = vpop.xlane.xlu1 %1263 }
 0x3a9   :  { %v1265_v7 = vmul.f32 0.0033333334, %v1264_v53 }
 0x3ab   :  { %v1267_v55 = vsub.f32 %v1265_v7, %v1266_v54 }
 0x3ad   :  { %v1268_v56 = vmax.f32 %v1267_v55, 0.0 }
 0x3af   :  { %v1272_v57 = vadd.f32 1e-05, %v1268_v56 }
 0x3b1   :  { %1666 = vrsqrt.f32 %v1272_v57 }
 0x3bb   :  { %v1667_v3 = vpop.eup %1666 }
 0x3bc   :  { %v1274_v11 = vmul.f32 %v1667_v3, %v1269_v2  ;;  %v1275_v12 = vmul.f32 %v1667_v3, %v1270_v5  ;;  %v1276_v13 = vmul.f32 %v1667_v3, %v1271_v6 }
 0x3be   :  { %v1295_v16 = vmul.f32 %v1283_v0, %v1274_v11  ;;  %v1296_v17 = vmul.f32 %v1287_v1, %v1275_v12  ;;  %v1297_v61 = vmul.f32 %v1291_v4, %v1276_v13 }
 0x3c0   :  { %v1316_v18 = vadd.f32 %v1304_v8, %v1295_v16  ;;  %v1317_v19 = vadd.f32 %v1308_v9, %v1296_v17  ;;  %v1318_v10 = vadd.f32 %v1312_v14, %v1297_v61 }
 0x3c2   :  { %v1319_v21 = vmax.f32 %v1316_v18, 0.0  ;;  %v1320_v22 = vmax.f32 %v1317_v19, 0.0  ;;  %v1321_v23 = vmax.f32 %v1318_v10, 0.0 }
 0x3c4   :  { %v1341_v25 = vmul.f32 %v1329_v60, %v1319_v21  ;;  %v1342_v26 = vmul.f32 %v1333_v20, %v1320_v22  ;;  %v1343_v27 = vmul.f32 %v1337_v24, %v1321_v23 }
 0x3c6   :  { %v1344_v28 = vadd.f32 %v1342_v26, %v1341_v25 }
 0x3c8   :  { %v1345_v29 = vadd.f32 %v1344_v28, %v1343_v27 }
 0x3ca   :  { %1346 = vadd.xlane.f32.xlu0 %v1345_v29 }
 0x457   :  { %v1347_v30 = vpop.xlane.xlu0 %1346 }
 0x458   :  { %v1348_v59 = vadd.f32 %v1347_v30, %v1324_v47 }
 0x45a   :  { %1350 = vst.msk [vmem:[%s1988_s7] sm:$0xff] %vm1349_vm4, %v1348_v59 }
 0x45b   :  { %1355 = vsyncpa [#allocation3], 1 }
 0x45c   :  { %1356 = vsyncpa [#allocation5], 1 }
 0x45d   :  { %1357 = vsyncpa [#allocation8], 1 }

</bundles_post_ra>
